<compile_context>
chip_gen: v7x
topology: tpu7x:2x2x1
jax: 0.10.0
libtpu: 0.0.40
codegen_flags: <defaults>
</compile_context>

<pallas_src>
import functools

import jax
import jax.numpy as jnp
import numpy as np
from jax.experimental import pallas as pl
from jax.experimental.pallas import tpu as pltpu

LANES = 128


def _fold_lanes(x):
    """Sum 128-wide lane blocks of a (rows, k*128) array -> (rows, 128).

    Static 128-aligned lane slices are pure vreg selections, so this is
    (k-1) VPU adds with no per-tile cross-lane XLU work.
    """
    _, cols = x.shape
    acc = x[:, :LANES]
    for k in range(1, cols // LANES):
        acc = acc + x[:, k * LANES:(k + 1) * LANES]
    return acc


# --------------------------------------------------------------------------
# Pass 1: teacher softmax -> per-crop targets (bf16) + center update.
# --------------------------------------------------------------------------
def _dino_teacher_kernel(params_ref, teacher_ref, center_ref,
                         targets_ref, new_center_ref):
    """grid=(2,): step iq processes teacher chunk iq.

    params_ref (SMEM f32[3]): [1/teacher_temp, center_momentum,
                               1/(2*batch*world_size)]
    targets (3, B, D) bf16 = [q1, q0, q0+q1]:
      student crop 0 pairs only with teacher chunk 1, crop 1 only with chunk 0,
      crops >= 2 with both (self-pairs excluded in the original double loop).
    """
    iq = pl.program_id(0)
    inv_teacher_temp = params_ref[0]
    momentum = params_ref[1]
    inv_center_denom = params_ref[2]

    chunk = teacher_ref[...].astype(jnp.float32)            # (B, D)
    center = center_ref[...].astype(jnp.float32)            # (1, D)

    t = (chunk - center) * inv_teacher_temp
    t = t - jnp.max(t, axis=-1, keepdims=True)
    e = jnp.exp(t)
    q = e * pl.reciprocal(jnp.sum(e, axis=-1, keepdims=True), approx=True)
    q_lo = q.astype(targets_ref.dtype)

    # update_center contribution of this chunk (single-device semantics).
    chunk_center = (jnp.sum(chunk, axis=0, keepdims=True)
                    * (inv_center_denom * (1.0 - momentum)))

    @pl.when(iq == 0)
    def _():
        targets_ref[1] = q_lo            # target for student crop v == 1 (q0)
        targets_ref[2] = q_lo            # start q0 + q1 accumulation
        new_center_ref[...] = center * momentum + chunk_center

    @pl.when(iq == 1)
    def _():
        targets_ref[0] = q_lo            # target for student crop v == 0 (q1)
        targets_ref[2] = (targets_ref[2].astype(jnp.float32) + q
                          ).astype(targets_ref.dtype)
        new_center_ref[...] = new_center_ref[...] + chunk_center


# --------------------------------------------------------------------------
# Pass 2: per-crop student cross-entropy, feature axis streamed.
# --------------------------------------------------------------------------
def _dino_crop_kernel(student_ref, target_ref, loss_ref,
                      m_ref, l_ref, dot_ref, *, inv_student_temp):
    """grid=(ncrops, D // tile_d): crop axis parallel, feature axis arbitrary.

    CE identity: sum_d(-q * log_softmax(s)) = n * lse(s) - sum_d(q * s) with
    n = sum_d q (1 for crops 0/1, 2 for crops >= 2), computed with an online
    (single-pass) lse so no (B, D) log-probs are ever materialized.
    """
    v = pl.program_id(0)
    d = pl.program_id(1)
    nd = pl.num_programs(1)

    @pl.when(d == 0)
    def _():
        m_ref[...] = jnp.full(m_ref.shape, -1e30, m_ref.dtype)
        l_ref[...] = jnp.zeros(l_ref.shape, l_ref.dtype)
        dot_ref[...] = jnp.zeros(dot_ref.shape, dot_ref.dtype)

    s = student_ref[...].astype(jnp.float32) * inv_student_temp   # (B, Td)
    t = target_ref[...].astype(jnp.float32)                       # (B, Td)

    m_old = m_ref[...]                                            # (B, 1)
    m_new = jnp.maximum(m_old, jnp.max(s, axis=-1, keepdims=True))
    alpha = jnp.exp(m_old - m_new)                                # (B, 1)
    p = jnp.exp(s - m_new)                                        # (B, Td) EUP

    l_ref[...] = l_ref[...] * alpha + _fold_lanes(p)              # (B, 128)
    dot_ref[...] = dot_ref[...] + _fold_lanes(t * s)              # (B, 128)
    m_ref[...] = m_new

    @pl.when(d == nd - 1)
    def _():
        lse = m_ref[...] + jnp.log(jnp.sum(l_ref[...], axis=-1, keepdims=True))
        dot = jnp.sum(dot_ref[...], axis=-1, keepdims=True)       # (B, 1)
        n_terms = jnp.where(v < 2, 1.0, 2.0)                      # pairs per crop
        total = jnp.sum(n_terms * lse - dot)
        loss_ref[...] = jnp.zeros(loss_ref.shape, loss_ref.dtype) + total


# --------------------------------------------------------------------------
# Wrapper
# --------------------------------------------------------------------------
def _pick_tile_d(out_dim, target=8192):
    # v5e/v6e: 8-16k feature tiles amortize per-step overhead; v7x (64 MiB
    # VMEM) prefers 4-8k.  8192 is a reasonable common default.
    if out_dim <= target:
        return out_dim
    for cand in range(target, LANES - 1, -LANES):
        if out_dim % cand == 0:
            return cand
    raise ValueError(f"out_dim={out_dim} must be a multiple of {LANES}")


def dino_loss_pallas(student_output, teacher_output, center, *, ncrops,
                     student_temp, teacher_temp, center_momentum,
                     world_size=1.0, tile_d=None):
    n_teacher, out_dim = teacher_output.shape
    batch = n_teacher // 2
    assert ncrops >= 2
    assert n_teacher == 2 * batch
    assert student_output.shape == (ncrops * batch, out_dim)
    assert out_dim % LANES == 0, "out_dim must be a multiple of 128"
    if tile_d is None:
        tile_d = _pick_tile_d(out_dim)
    assert out_dim % tile_d == 0 and tile_d % LANES == 0

    # ---- pass 1: teacher softmax -> targets + center update ---------------
    params = jnp.array([1.0 / teacher_temp,
                        center_momentum,
                        1.0 / (2.0 * batch * world_size)], dtype=jnp.float32)

    teacher_vmem = int(2 * batch * out_dim * 4      # chunk (double buffered)
                       + out_dim * 4                # center (single buffered)
                       + 3 * batch * out_dim * 2    # targets (single buffered)
                       + out_dim * 4                # new center
                       + (4 << 20))                 # headroom
    targets, new_center = pl.pallas_call(
        _dino_teacher_kernel,
        grid=(2,),
        in_specs=[
            pl.BlockSpec(memory_space=pltpu.MemorySpace.SMEM),
            pl.BlockSpec((batch, out_dim), lambda i: (i, 0)),
            pl.BlockSpec((1, out_dim), lambda i: (0, 0),
                         pipeline_mode=pl.Buffered(1)),
        ],
        out_specs=(
            pl.BlockSpec((3, batch, out_dim), lambda i: (0, 0, 0),
                         pipeline_mode=pl.Buffered(1)),
            pl.BlockSpec((1, out_dim), lambda i: (0, 0),
                         pipeline_mode=pl.Buffered(1)),
        ),
        out_shape=(
            jax.ShapeDtypeStruct((3, batch, out_dim), jnp.bfloat16),
            jax.ShapeDtypeStruct((1, out_dim), jnp.float32),
        ),
        compiler_params=pltpu.CompilerParams(
            dimension_semantics=("arbitrary",),
            vmem_limit_bytes=min(max(teacher_vmem, 16 << 20), 100 << 20)),
        cost_estimate=pl.CostEstimate(
            flops=int(12 * batch * out_dim),
            transcendentals=int(2 * batch * out_dim + 2 * batch),
            bytes_accessed=int(2 * batch * out_dim * 4 + out_dim * 8
                               + 3 * batch * out_dim * 2)),
    )(params, teacher_output, center)

    # ---- pass 2: per-crop student log-softmax cross-entropy ----------------
    num_d = out_dim // tile_d
    pad8 = -(-batch // 8) * 8
    crop_vmem = int(2 * batch * tile_d * 4          # student tile (dbl-buf)
                    + 2 * batch * tile_d * 2        # target tile (dbl-buf)
                    + 2 * 8 * LANES * 4             # loss block
                    + 3 * pad8 * LANES * 4          # scratches (padded)
                    + (4 << 20))                    # headroom
    kernel = functools.partial(_dino_crop_kernel,
                               inv_student_temp=1.0 / student_temp)
    loss_partials = pl.pallas_call(
        kernel,
        grid=(ncrops, num_d),
        in_specs=[
            pl.BlockSpec((batch, tile_d), lambda v, d: (v, d)),
            pl.BlockSpec((None, batch, tile_d),
                         lambda v, d: (jnp.minimum(v, 2), 0, d)),
        ],
        out_specs=pl.BlockSpec((None, 8, LANES), lambda v, d: (v, 0, 0)),
        out_shape=jax.ShapeDtypeStruct((ncrops, 8, LANES), jnp.float32),
        scratch_shapes=[
            pltpu.VMEM((batch, 1), jnp.float32),      # running row max
            pltpu.VMEM((batch, LANES), jnp.float32),  # lane-partial sum(exp)
            pltpu.VMEM((batch, LANES), jnp.float32),  # lane-partial sum(q*s)
        ],
        compiler_params=pltpu.CompilerParams(
            dimension_semantics=("parallel", "arbitrary"),
            vmem_limit_bytes=min(max(crop_vmem, 16 << 20), 100 << 20)),
        cost_estimate=pl.CostEstimate(
            flops=int(5 * ncrops * batch * out_dim),
            transcendentals=int(ncrops * batch * out_dim),
            bytes_accessed=int(ncrops * batch * out_dim * (4 + 2)
                               + ncrops * 8 * LANES * 4)),
    )(student_output, targets)

    n_loss_terms = 2 * (ncrops - 1)
    loss = jnp.sum(loss_partials[:, 0, 0]) / (batch * n_loss_terms)
    return loss, new_center


class DINOLossPallas:
    """JAX/Pallas port of the PyTorch DINOLoss module (single device)."""

    def __init__(self, out_dim, ncrops, warmup_teacher_temp, teacher_temp,
                 warmup_teacher_temp_epochs, nepochs,
                 student_temp=0.1, center_momentum=0.9):
        self.student_temp = student_temp
        self.center_momentum = center_momentum
        self.ncrops = ncrops
        self.center = jnp.zeros((1, out_dim), dtype=jnp.float32)  # buffer
        self.teacher_temp_schedule = np.concatenate((
            np.linspace(warmup_teacher_temp, teacher_temp,
                        warmup_teacher_temp_epochs),
            np.ones(nepochs - warmup_teacher_temp_epochs) * teacher_temp,
        ))

    def __call__(self, student_output, teacher_output, epoch, tile_d=None):
        temp = float(self.teacher_temp_schedule[epoch])
        loss, new_center = dino_loss_pallas(
            student_output, teacher_output, self.center,
            ncrops=self.ncrops,
            student_temp=self.student_temp,
            teacher_temp=temp,
            center_momentum=self.center_momentum,
            world_size=1.0,
            tile_d=tile_d,
        )
        self.center = new_center
        return loss


def _reference(student_output, teacher_output, center, ncrops,
               student_temp, teacher_temp, center_momentum):
    """Pure-JAX reference mirroring the PyTorch forward (world_size=1)."""
    student_out = jnp.split(student_output / student_temp, ncrops, axis=0)
    teacher_out = jax.nn.softmax((teacher_output - center) / teacher_temp, axis=-1)
    teacher_out = jnp.split(teacher_out, 2, axis=0)
    total_loss, n_terms = 0.0, 0
    for iq, q in enumerate(teacher_out):
        for v in range(len(student_out)):
            if v == iq:
                continue
            loss = jnp.sum(-q * jax.nn.log_softmax(student_out[v], axis=-1), axis=-1)
            total_loss += loss.mean()
            n_terms += 1
    total_loss /= n_terms
    batch_center = jnp.sum(teacher_output, axis=0, keepdims=True) / teacher_output.shape[0]
    new_center = center * center_momentum + batch_center * (1 - center_momentum)
    return total_loss, new_center


if __name__ == "__main__":
    out_dim = 512
    batch = 8
    ncrops = 4
    epoch = 3

    key = jax.random.PRNGKey(0)
    k_s, k_t = jax.random.split(key)
    student_output = jax.random.normal(k_s, (ncrops * batch, out_dim), jnp.float32)
    teacher_output = jax.random.normal(k_t, (2 * batch, out_dim), jnp.float32)

    dino = DINOLossPallas(out_dim=out_dim, ncrops=ncrops,
                          warmup_teacher_temp=0.04, teacher_temp=0.07,
                          warmup_teacher_temp_epochs=10, nepochs=100,
                          student_temp=0.1, center_momentum=0.9)

    # tile_d=256 exercises the feature-axis grid (2 tiles) at demo size.
    loss = dino(student_output, teacher_output, epoch, tile_d=256)
    loss = jax.block_until_ready(loss)
    new_center = jax.block_until_ready(dino.center)

    # sanity check against a pure-JAX reference
    ref_loss, ref_center = _reference(
        student_output, teacher_output, jnp.zeros((1, out_dim), jnp.float32),
        ncrops, 0.1, float(dino.teacher_temp_schedule[epoch]), 0.9)

    # bf16 targets + approx reciprocal in the teacher softmax -> relaxed loss tol.
    assert jnp.allclose(loss, ref_loss, rtol=2e-2, atol=2e-2), (loss, ref_loss)
    assert jnp.allclose(new_center, ref_center, rtol=1e-5, atol=1e-5), "center mismatch"

    print("KERNEL_OK")
</pallas_src>

<mosaic_0001>
module attributes {stable_mosaic.version = 11 : i64} {
  func.func @_dino_teacher_kernel(%arg0: i32, %arg1: memref<3xf32, #tpu.memory_space<smem>>, %arg2: memref<8x512xf32, #tpu.memory_space<vmem>>, %arg3: memref<1x512xf32, #tpu.memory_space<vmem>>, %arg4: memref<3x8x512xbf16, #tpu.memory_space<vmem>>, %arg5: memref<1x512xf32, #tpu.memory_space<vmem>>) attributes {dimension_semantics = [#tpu.dimension_semantics<arbitrary>], iteration_bounds = array<i64: 2>, scalar_prefetch = 0 : i64, scratch_operands = 0 : i64, tpu.core_type = #tpu.core_type<tc>, window_params = [{transform_indices = @transform_0, window_bounds = array<i64: 3>}, {transform_indices = @transform_1, window_bounds = array<i64: 8, 512>}, {pipeline_mode = #tpu.pipeline_mode<synchronous>, transform_indices = @transform_2, window_bounds = array<i64: 1, 512>}, {pipeline_mode = #tpu.pipeline_mode<synchronous>, transform_indices = @transform_3, window_bounds = array<i64: 3, 8, 512>}, {pipeline_mode = #tpu.pipeline_mode<synchronous>, transform_indices = @transform_4, window_bounds = array<i64: 1, 512>}]} {
    %c0 = arith.constant 0 : index
    %0 = memref.load %arg1[%c0] : memref<3xf32, #tpu.memory_space<smem>>
    %c1 = arith.constant 1 : index
    %1 = memref.load %arg1[%c1] : memref<3xf32, #tpu.memory_space<smem>>
    %c2 = arith.constant 2 : index
    %2 = memref.load %arg1[%c2] : memref<3xf32, #tpu.memory_space<smem>>
    %c0_0 = arith.constant 0 : index
    %c0_1 = arith.constant 0 : index
    %3 = vector.load %arg2[%c0_0, %c0_1] : memref<8x512xf32, #tpu.memory_space<vmem>>, vector<8x512xf32>
    %c0_2 = arith.constant 0 : index
    %c0_3 = arith.constant 0 : index
    %4 = vector.load %arg3[%c0_2, %c0_3] : memref<1x512xf32, #tpu.memory_space<vmem>>, vector<1x512xf32>
    %5 = vector.broadcast %4 : vector<1x512xf32> to vector<8x512xf32>
    %6 = arith.subf %3, %5 : vector<8x512xf32>
    %7 = vector.broadcast %0 : f32 to vector<8x512xf32>
    %8 = arith.mulf %6, %7 : vector<8x512xf32>
    %cst = arith.constant dense<0xFF800000> : vector<8xf32>
    %9 = vector.multi_reduction <maximumf>, %8, %cst [1] : vector<8x512xf32> to vector<8xf32>
    %10 = vector.shape_cast %9 : vector<8xf32> to vector<8x1xf32>
    %11 = vector.broadcast %10 : vector<8x1xf32> to vector<8x512xf32>
    %12 = arith.subf %8, %11 : vector<8x512xf32>
    %13 = math.exp %12 : vector<8x512xf32>
    %cst_4 = arith.constant dense<0.000000e+00> : vector<8xf32>
    %14 = vector.multi_reduction <add>, %13, %cst_4 [1] : vector<8x512xf32> to vector<8xf32>
    %15 = vector.shape_cast %14 : vector<8xf32> to vector<8x1xf32>
    %16 = tpu.reciprocal %15 {approx = true} : vector<8x1xf32> -> vector<8x1xf32>
    %17 = vector.broadcast %16 : vector<8x1xf32> to vector<8x512xf32>
    %18 = arith.mulf %13, %17 : vector<8x512xf32>
    %19 = arith.truncf %18 : vector<8x512xf32> to vector<8x512xbf16>
    %cst_5 = arith.constant dense<0.000000e+00> : vector<512xf32>
    %20 = vector.multi_reduction <add>, %3, %cst_5 [0] : vector<8x512xf32> to vector<512xf32>
    %21 = vector.shape_cast %20 : vector<512xf32> to vector<1x512xf32>
    %cst_6 = arith.constant 1.000000e+00 : f32
    %22 = arith.subf %cst_6, %1 : f32
    %23 = arith.mulf %2, %22 : f32
    %24 = vector.broadcast %23 : f32 to vector<1x512xf32>
    %25 = arith.mulf %21, %24 : vector<1x512xf32>
    %c0_i32 = arith.constant 0 : i32
    %26 = arith.cmpi eq, %arg0, %c0_i32 : i32
    %27 = arith.extui %26 : i1 to i32
    %c0_i32_7 = arith.constant 0 : i32
    %28 = arith.cmpi ne, %27, %c0_i32_7 : i32
    scf.if %28 {
      %c1_9 = arith.constant 1 : index
      %c0_10 = arith.constant 0 : index
      %c0_11 = arith.constant 0 : index
      %32 = vector.load %arg4[%c1_9, %c0_10, %c0_11] : memref<3x8x512xbf16, #tpu.memory_space<vmem>>, vector<1x8x512xbf16>
      %33 = vector.shape_cast %32 : vector<1x8x512xbf16> to vector<8x512xbf16>
      %34 = vector.shape_cast %19 : vector<8x512xbf16> to vector<1x8x512xbf16>
      tpu.vector_store %arg4[%c1_9, %c0_10, %c0_11], %34 {strides = array<i32>} : memref<3x8x512xbf16, #tpu.memory_space<vmem>>, vector<1x8x512xbf16>,
      %c2_12 = arith.constant 2 : index
      %c0_13 = arith.constant 0 : index
      %c0_14 = arith.constant 0 : index
      %35 = vector.load %arg4[%c2_12, %c0_13, %c0_14] : memref<3x8x512xbf16, #tpu.memory_space<vmem>>, vector<1x8x512xbf16>
      %36 = vector.shape_cast %35 : vector<1x8x512xbf16> to vector<8x512xbf16>
      %37 = vector.shape_cast %19 : vector<8x512xbf16> to vector<1x8x512xbf16>
      tpu.vector_store %arg4[%c2_12, %c0_13, %c0_14], %37 {strides = array<i32>} : memref<3x8x512xbf16, #tpu.memory_space<vmem>>, vector<1x8x512xbf16>,
      %38 = vector.broadcast %1 : f32 to vector<1x512xf32>
      %39 = arith.mulf %4, %38 : vector<1x512xf32>
      %40 = arith.addf %39, %25 : vector<1x512xf32>
      %c0_15 = arith.constant 0 : index
      %c0_16 = arith.constant 0 : index
      %41 = vector.load %arg5[%c0_15, %c0_16] : memref<1x512xf32, #tpu.memory_space<vmem>>, vector<1x512xf32>
      tpu.vector_store %arg5[%c0_15, %c0_16], %40 {strides = array<i32>} : memref<1x512xf32, #tpu.memory_space<vmem>>, vector<1x512xf32>,
    } else {
    }
    %c1_i32 = arith.constant 1 : i32
    %29 = arith.cmpi eq, %arg0, %c1_i32 : i32
    %30 = arith.extui %29 : i1 to i32
    %c0_i32_8 = arith.constant 0 : i32
    %31 = arith.cmpi ne, %30, %c0_i32_8 : i32
    scf.if %31 {
      %c0_9 = arith.constant 0 : index
      %c0_10 = arith.constant 0 : index
      %c0_11 = arith.constant 0 : index
      %32 = vector.load %arg4[%c0_9, %c0_10, %c0_11] : memref<3x8x512xbf16, #tpu.memory_space<vmem>>, vector<1x8x512xbf16>
      %33 = vector.shape_cast %32 : vector<1x8x512xbf16> to vector<8x512xbf16>
      %34 = vector.shape_cast %19 : vector<8x512xbf16> to vector<1x8x512xbf16>
      tpu.vector_store %arg4[%c0_9, %c0_10, %c0_11], %34 {strides = array<i32>} : memref<3x8x512xbf16, #tpu.memory_space<vmem>>, vector<1x8x512xbf16>,
      %c2_12 = arith.constant 2 : index
      %c0_13 = arith.constant 0 : index
      %c0_14 = arith.constant 0 : index
      %35 = vector.load %arg4[%c2_12, %c0_13, %c0_14] : memref<3x8x512xbf16, #tpu.memory_space<vmem>>, vector<1x8x512xbf16>
      %36 = vector.shape_cast %35 : vector<1x8x512xbf16> to vector<8x512xbf16>
      %37 = arith.extf %36 : vector<8x512xbf16> to vector<8x512xf32>
      %38 = arith.addf %37, %18 : vector<8x512xf32>
      %39 = arith.truncf %38 : vector<8x512xf32> to vector<8x512xbf16>
      %c2_15 = arith.constant 2 : index
      %c0_16 = arith.constant 0 : index
      %c0_17 = arith.constant 0 : index
      %40 = vector.load %arg4[%c2_15, %c0_16, %c0_17] : memref<3x8x512xbf16, #tpu.memory_space<vmem>>, vector<1x8x512xbf16>
      %41 = vector.shape_cast %40 : vector<1x8x512xbf16> to vector<8x512xbf16>
      %42 = vector.shape_cast %39 : vector<8x512xbf16> to vector<1x8x512xbf16>
      tpu.vector_store %arg4[%c2_15, %c0_16, %c0_17], %42 {strides = array<i32>} : memref<3x8x512xbf16, #tpu.memory_space<vmem>>, vector<1x8x512xbf16>,
      %c0_18 = arith.constant 0 : index
      %c0_19 = arith.constant 0 : index
      %43 = vector.load %arg5[%c0_18, %c0_19] : memref<1x512xf32, #tpu.memory_space<vmem>>, vector<1x512xf32>
      %44 = arith.addf %43, %25 : vector<1x512xf32>
      %c0_20 = arith.constant 0 : index
      %c0_21 = arith.constant 0 : index
      %45 = vector.load %arg5[%c0_20, %c0_21] : memref<1x512xf32, #tpu.memory_space<vmem>>, vector<1x512xf32>
      tpu.vector_store %arg5[%c0_20, %c0_21], %44 {strides = array<i32>} : memref<1x512xf32, #tpu.memory_space<vmem>>, vector<1x512xf32>,
    } else {
    }
    return
  }
  func.func @transform_0(%arg0: i32) -> i32 {
    %c0_i32 = arith.constant 0 : i32
    %c0_i32_0 = arith.constant 0 : i32
    return %c0_i32 : i32
  }
  func.func @transform_1(%arg0: i32) -> (i32, i32) {
    %c0_i32 = arith.constant 0 : i32
    %c0_i32_0 = arith.constant 0 : i32
    return %arg0, %c0_i32 : i32, i32
  }
  func.func @transform_2(%arg0: i32) -> (i32, i32) {
    %c0_i32 = arith.constant 0 : i32
    %c0_i32_0 = arith.constant 0 : i32
    %c0_i32_1 = arith.constant 0 : i32
    return %c0_i32, %c0_i32_0 : i32, i32
  }
  func.func @transform_3(%arg0: i32) -> (i32, i32, i32) {
    %c0_i32 = arith.constant 0 : i32
    %c0_i32_0 = arith.constant 0 : i32
    %c0_i32_1 = arith.constant 0 : i32
    %c0_i32_2 = arith.constant 0 : i32
    return %c0_i32, %c0_i32_0, %c0_i32_1 : i32, i32, i32
  }
  func.func @transform_4(%arg0: i32) -> (i32, i32) {
    %c0_i32 = arith.constant 0 : i32
    %c0_i32_0 = arith.constant 0 : i32
    %c0_i32_1 = arith.constant 0 : i32
    return %c0_i32, %c0_i32_0 : i32, i32
  }
}

</mosaic_0001>

<bundles_post_ra>
// kernel: tpu_custom_call.1
= control target key start
LH: loop header
LB: loop body
LE: loop exit
PB: predicated region body
PF: predicated region fallthrough
CT: control target
= control target key end

     0   :  { %10 = vsyncpa [#allocation5], 0  ;;  %s1075_s0 = inlined_call_operand.hbm [shape: f32[3], index: 0, kind: input, shape index: {}]   ;;  %s1076_s1 = inlined_call_operand.hbm [shape: f32[16,512], index: 1, kind: input, shape index: {}]   ;;  %s1077_s2 = inlined_call_operand.vmem [shape: f32[1,512], index: 2, kind: input, shape index: {}]   ;;  %s1078_s3 = inlined_call_operand.hbm [shape: bf16[3,8,512], index: 3, kind: output, shape index: {0}]   ;;  %s1079_s4 = inlined_call_operand.hbm [shape: f32[1,512], index: 4, kind: output, shape index: {1}]  }
   0x1   :  { %11 = vsyncpa [#allocation3], 0 }
   0x2   :  { %13 = vsyncpa [#allocation3 + $0x1], 0 }
   0x3   :  { %14 = vsyncpa [#allocation4], 0 }
   0x4   :  { %15 = vsyncpa [#allocation9], 0  ;;  %s835_s15 = smov 0   ;;  %s837_s16 = smov 0  }
   0x5   :  { %s839_s17 = smov 0   ;;  %s841_s18 = smov 0  }
   0x6 LB: > { %s854_s19 = sadd.s32 4294967295, %s800_s18   ;;  %p62_p0 = scmp.ne.s32.totalorder %s792_s16, %s788_s15  ;;  %s800_s18 = sphi %s841_s18, %s1094_s18   ;;  %s796_s17 = sphi %s839_s17, %s1093_s17   ;;  %s792_s16 = sphi %s837_s16, %s1092_s16   ;;  %s788_s15 = sphi %s835_s15, %s1091_s15  }
   0x7   : > { %p1080_p1 = scmp.eq.s32.totalorder %s854_s19, 0  ;;  %p549_p2 = scmp.ge.s32.totalorder %s800_s18, 1 }
   0x8   : > { %p136_p3 = scmp.lt.s32.totalorder %s800_s18, 3  ;;  %s872_s22 = sadd.s32 1, %s800_s18  }
   0x9   : > { %p863_p5 = por %p1080_p1, %p62_p0  ;;  %s46_s23 = ssub.s32 %s800_s18, %s872_s22 }
   0xa   : > { %p867_p6 = pnand %p549_p2, %p136_p3  ;;  %s49_s24 = sadd.s32 1, %s796_s17 }
   0xb   : > { %s1082_s20 = scalar_select %p863_p5, 1, 0 }
   0xc   : > { %p595_p7 = pneg %p867_p6  ;;  %p885_p9 = scmp.eq.s32.totalorder %s46_s23, 0 }
   0xd   : > { %p56_p10 = scmp.ne.s32.totalorder %s796_s17, %s792_s16  ;;  %p57_p11 = scmp.eq.s32.totalorder %s800_s18, 0 }
   0xe   : > { %p881_p8 = pnand %p595_p7, %p1080_p1  ;;  %p604_p12 = scmp.lt.s32.totalorder %s800_s18, 2 }
   0xf   : > { %s659_s29 = scalar_lea.hbm %s1075_s0, 16 }
  0x10   : > { %p660_p13 = scmp.ne.s32.totalorder %s1075_s0, %s659_s29  ;;  %p661_p0 = pneg %p881_p8 }
  0x11   : > { %p666_p7 = scmp.lt.u32.totalorder %s659_s29, %s1075_s0 }
  0x12   : > { %p662_p2 = pnand %p661_p0, %p660_p13 }
  0x14   : > { %p663_p3 = pneg %p662_p2 }
  0x16   : > { %p668_p4 = pnand %p666_p7, %p663_p3 }
  0x18   : > { %671 = shalt.err (!%p668_p4)
}
  0x19   : > { %s802_s8 = smov [#allocation2]   ;;  %p58_p4 = por %p57_p11, %p56_p10 }
  0x1a   : > { %598 = dma.hbm_to_smem (!%p881_p8), %s1075_s0, 16, %s802_s8, [#allocation5]  }
  0x1b   : > { %s912_s11 = scalar_select %p885_p9, %s796_s17, %s49_s24  }
  0x1c   : > { %s161_s12 = sand.u32 1, %s796_s17   ;;  %s574_s14 = sshll.u32 %s800_s18, 9 }
  0x1d   : > { %s552_s13 = sshll.u32 %s161_s12, 5  ;;  %s924_s25 = scalar_lea.hbm %s1076_s1, %s574_s14 }
  0x1e   : > { %s165_s27 = scalar_lea.vmem [#allocation6], %s552_s13  ;;  %p930_p8 = pnand %p604_p12, %p58_p4 }
  0x1f   : > { %s173_s28 = sshll.u32 %s165_s27, 4  ;;  %s162_s26 = scalar_lea.sflag [#allocation3], %s161_s12  ;;  %s926_s28 = int_to_ptr.vmem [resolvable:$true] %s173_s28 }
  0x20   : > { %s672_s29 = scalar_lea.hbm %s924_s25, 512  ;;  %p674_p10 = pneg %p930_p8 }
  0x21   : > { %p673_p9 = scmp.ne.s32.totalorder %s924_s25, %s672_s29  ;;  %s677_s6 = scalar_lea.hbm %s1076_s1, 1024 }
  0x22   : > { %p678_p12 = scmp.lt.u32.totalorder %s924_s25, %s1076_s1  ;;  %p679_p0 = scmp.lt.u32.totalorder %s677_s6, %s672_s29 }
  0x23   : > { %p675_p11 = pnand %p674_p10, %p673_p9  ;;  %p681_p3 = scmp.lt.u32.totalorder %s672_s29, %s924_s25 }
  0x24   : > { %p680_p2 = por %p679_p0, %p678_p12 }
  0x25   : > { %p676_p13 = pneg %p675_p11 }
  0x26   : > { %p682_p7 = por %p681_p3, %p680_p2 }
  0x28   : > { %p683_p4 = pnand %p682_p7, %p676_p13 }
  0x2a   : > { %686 = shalt.err (!%p683_p4)
}
  0x2b   : > { %s687_s8 = scalar_lea.vmem %s926_s28, 512  ;;  %s803_s9 = smov [#allocation6]  }
  0x2c   : > { %p688_p9 = scmp.ne.s32.totalorder %s926_s28, %s687_s8  ;;  %s692_s10 = sshll.u32 %s803_s9, 4  ;;  %s693_s10 = int_to_ptr.vmem [resolvable:$false] %s692_s10 }
  0x2d   : > { %s694_s12 = scalar_lea.vmem %s693_s10, 1024  ;;  %p695_p5 = scmp.lt.s32.totalorder %s926_s28, %s693_s10 }
  0x2e   : > { %p690_p11 = pnand %p688_p9, %p674_p10  ;;  %p696_p12 = scmp.lt.s32.totalorder %s694_s12, %s687_s8 }
  0x30   : > { %p691_p1 = pneg %p690_p11  ;;  %p697_p0 = por %p696_p12, %p695_p5 }
  0x32   : > { %p698_p2 = pnand %p697_p0, %p691_p1 }
  0x34   : > { %701 = shalt.err (!%p698_p2)
}
  0x35   : > { %602 = dma.hbm_to_vmem [thread:$0]  (!%p930_p8), %s924_s25, 512, %s926_s28, %s162_s26  }
  0x36   : > { %182 = sbr.rel (%p867_p6) target bundleno = 475 (0x1db), region = 32  ;;  %p1087_p10 = scmp.eq.s32.totalorder (!%p867_p6), %s854_s19, 0 }
  0x3d   : > { %771 = dma.done.wait (%p1087_p10), [#allocation5], 16   ;;  %p1088_p13 = pmov %p1087_p10 }
  0x3e   : > { %s188_s13 = sand.u32 1, %s792_s16   ;;  %p1089_p1 = scmp.ne.s32.totalorder %s1082_s20, 0 }
  0x3f   : > { %773 = vsyncadd (%p1088_p13), [#allocation5], 4294967280  ;;  %s557_s14 = sshll.u32 %s188_s13, 5  ;;  %s189_s15 = scalar_lea.sflag [#allocation3], %s188_s13 }
  0x40   : > { %s192_s23 = scalar_lea.vmem [#allocation6], %s557_s14 }
  0x41   : > { %775 = dma.done.wait (%p1089_p1), %s189_s15, 512  }
  0x42   : > { %777 = vsyncadd (%p1089_p1), %s189_s15, 4294966784 }
  0x43   : > { %197 = sfence }
  0x44   : > { %s213_s21 = sld [smem:[#allocation2]]  ;;  %s970_s25 = sld [smem:[#allocation2 + $0x1]]  ;;  %v222_v0 = vlaneseq  ;;  %v216_v1 = vld [vmem:[%s192_s23] sm:$0xff]  ;;  %v217_v2 = vld [vmem:[%s192_s23 + $0x8] sm:$0xff]  ;;  %v218_v3 = vld [vmem:[%s192_s23 + $0x10] sm:$0xff] }
  0x45   : > { %s972_s27 = sld [smem:[#allocation2 + $0x2]]  ;;  %v219_v4 = vld [vmem:[%s192_s23 + $0x18] sm:$0xff]  ;;  %v282_v6 = vrot.slane %v216_v1, 4  ;;  %v288_v7 = vrot.slane %v217_v2, 4  ;;  %v294_v8 = vrot.slane %v218_v3, 4  ;;  %p1090_p5 = scmp.ne.s32.totalorder %s854_s19, 0 }
  0x46   : > { %v975_v5 = vshrl.u32 %v222_v0, 7  ;;  %v980_v9 = vld [vmem:[%s1077_s2] sm:$0xf]  ;;  %v300_v10 = vrot.slane %v219_v4, 4  ;;  %vm369_vm0 = vcmp.lt.s32.totalorder (!%p1090_p5), %v222_v0, 512 }
  0x47   : > { %v283_v15 = vadd.f32 %v282_v6, %v216_v1  ;;  %v289_v16 = vadd.f32 %v288_v7, %v217_v2  ;;  %v295_v17 = vadd.f32 %v294_v8, %v218_v3 }
  0x48   : > { %v224_v11 = vsub.s32 0, %v975_v5  ;;  %v228_v12 = vsub.s32 1, %v975_v5  ;;  %v232_v13 = vsub.s32 2, %v975_v5  ;;  %v236_v14 = vsub.s32 3, %v975_v5 }
  0x49   : > { %v301_v18 = vadd.f32 %v300_v10, %v219_v4  ;;  %v284_v24 = vrot.slane %v283_v15, 2  ;;  %v290_v25 = vrot.slane %v289_v16, 2  ;;  %v296_v26 = vrot.slane %v295_v17, 2 }
  0x4a   : > { %v225_v19 = vrot.slane %v980_v9, %v224_v11  ;;  %v229_v20 = vrot.slane %v980_v9, %v228_v12  ;;  %v233_v21 = vrot.slane %v980_v9, %v232_v13  ;;  %v237_v22 = vrot.slane %v980_v9, %v236_v14  ;;  %s306_s24 = ssub.f32 1.0, %s970_s25 }
  0x4b   : > { %v246_v23 = vstv %s213_s21  ;;  %v285_v31 = vadd.f32 %v284_v24, %v283_v15  ;;  %v291_v32 = vadd.f32 %v290_v25, %v289_v16  ;;  %v297_v33 = vadd.f32 %v296_v26, %v295_v17 }
  0x4c   : > { %v242_v27 = vsub.f32 %v216_v1, %v225_v19  ;;  %v243_v28 = vsub.f32 %v217_v2, %v229_v20  ;;  %v244_v29 = vsub.f32 %v218_v3, %v233_v21  ;;  %v245_v30 = vsub.f32 %v219_v4, %v237_v22  ;;  %s307_s26 = smul.f32 %s972_s27, %s306_s24 }
  0x4d   : > { %v302_v34 = vrot.slane %v301_v18, 2  ;;  %v286_v39 = vrot.slane %v285_v31, 1  ;;  %v292_v40 = vrot.slane %v291_v32, 1  ;;  %v298_v41 = vrot.slane %v297_v33, 1 }
  0x4e   : > { %v247_v35 = vmul.f32 %v246_v23, %v242_v27  ;;  %v248_v36 = vmul.f32 %v246_v23, %v243_v28  ;;  %v249_v37 = vmul.f32 %v246_v23, %v244_v29  ;;  %v250_v38 = vmul.f32 %v246_v23, %v245_v30 }
  0x4f   : > { %v303_v42 = vadd.f32 %v302_v34, %v301_v18  ;;  %v308_v45 = vstv %s307_s26  ;;  %v287_v46 = vadd.f32 %v286_v39, %v285_v31  ;;  %v293_v47 = vadd.f32 %v292_v40, %v291_v32 }
  0x50   : > { %v251_v43 = vmax.f32 %v247_v35, %v248_v36  ;;  %v252_v44 = vmax.f32 %v249_v37, %v250_v38  ;;  %v299_v48 = vadd.f32 %v298_v41, %v297_v33  ;;  %v804_v19 = vmov (!%p1090_p5), 1966171168  }
  0x51   : > { %v304_v49 = vrot.slane %v303_v42, 1  ;;  %v992_v52 = vmul.f32 %v308_v45, %v287_v46  ;;  %v994_v53 = vmul.f32 %v308_v45, %v293_v47  ;;  %v344_v20 = vunpack.c.l.s4 (!%p1090_p5), %v804_v19 }
  0x52   : > { %v253_v50 = vmax.f32 %v251_v43, %v252_v44  ;;  %v996_v54 = vmul.f32 %v308_v45, %v299_v48  ;;  %v335_v25 = vstv (!%p1090_p5), %s970_s25 }
  0x53   : > { %v305_v51 = vadd.f32 %v304_v49, %v303_v42  ;;  %v341_v21 = vcombine.low (!%p1090_p5), %v992_v52, %v994_v53  ;;  %v345_v23 = vunpack.c.0.s8 (!%p1090_p5), %v344_v20  ;;  %v336_v28 = vmul.f32 (!%p1090_p5), %v335_v25, %v980_v9 }
  0x54   : > { %254 = vmax.xlane.f32.xlu0 %v253_v50 }
  0x55   : > { %v998_v55 = vmul.f32 %v308_v45, %v305_v51  ;;  %v348_v24 = vsub.s32 (!%p1090_p5), %v345_v23, %v975_v5 }
  0x57   : > { %v342_v22 = vcombine.low (!%p1090_p5), %v996_v54, %v998_v55  ;;  %v349_v26 = vrot.slane (!%p1090_p5), %v341_v21, %v348_v24 }
  0x59   : > { %v356_v27 = vrot.slane (!%p1090_p5), %v342_v22, %v348_v24 }
  0x5b   : > { %v357_v29 = vcombine.low (!%p1090_p5), %v349_v26, %v356_v27 }
  0x5d   : > { %v364_v30 = vrot.slane (!%p1090_p5), %v357_v29, %v348_v24 }
  0x5f   : > { %v366_v31 = vadd.f32 (!%p1090_p5), %v364_v30, %v336_v28 }
  0x61   : > { %371 = vst.msk [vmem:[#allocation8] sm:$0xf] (!%p1090_p5), %vm369_vm0, %v366_v31 }
  0xe1   : > { %v255_v56 = vpop.xlane.xlu0 %254 }
  0xe2   : > { %v256_v57 = vsub.f32 %v247_v35, %v255_v56  ;;  %v257_v58 = vsub.f32 %v248_v36, %v255_v56  ;;  %v258_v59 = vsub.f32 %v249_v37, %v255_v56  ;;  %v259_v60 = vsub.f32 %v250_v38, %v255_v56 }
  0xe4   : > { %v260_v61 = vmul.f32 1.442695, %v256_v57  ;;  %v262_v62 = vmul.f32 1.442695, %v257_v58  ;;  %v264_v63 = vmul.f32 1.442695, %v258_v59 }
  0xe5   : > { %v266_v1 = vmul.f32 1.442695, %v259_v60 }
  0xe6   : > { %649 = vpow2.f32 %v260_v61 }
  0xe7   : > { %651 = vpow2.f32 %v262_v62 }
  0xe8   : > { %653 = vpow2.f32 %v264_v63 }
  0xe9   : > { %655 = vpow2.f32 %v266_v1 }
  0xf0   : > { %v650_v2 = vpop.eup %649 }
  0xf1   : > { %v652_v3 = vpop.eup %651 }
  0xf2   : > { %v268_v4 = vadd.f32 %v652_v3, %v650_v2  ;;  %v654_v6 = vpop.eup %653 }
  0xf3   : > { %v656_v8 = vpop.eup %655 }
  0xf4   : > { %v269_v7 = vadd.f32 %v654_v6, %v268_v4 }
  0xf6   : > { %v270_v10 = vadd.f32 %v656_v8, %v269_v7 }
  0xf8   : > { %271 = vadd.xlane.f32.xlu0 %v270_v10 }
 0x185   : > { %v272_v11 = vpop.xlane.xlu0 %271 }
 0x186   : > { %657 = vrcp.f32 %v272_v11 }
 0x18b   : > { %316 = sbr.rel (%p1090_p5) target bundleno = 407 (0x197), region = 44 }
 0x190   : > { %v658_v12 = vpop.eup %657 }
 0x191   : > { %v274_v13 = vmul.f32 %v658_v12, %v650_v2  ;;  %v275_v14 = vmul.f32 %v658_v12, %v652_v3  ;;  %v276_v15 = vmul.f32 %v658_v12, %v654_v6  ;;  %v277_v16 = vmul.f32 %v658_v12, %v656_v8 }
 0x193   : > { %v575_v17 = vpack.c.bf16 %v275_v14, %v274_v13  ;;  %v576_v18 = vpack.c.bf16 %v277_v16, %v276_v15 }
 0x195   : > { %330 = vst [vmem:[#allocation7 + $0x10] sm:$0xff] %v575_v17  ;;  %333 = vst [vmem:[#allocation7 + $0x20] sm:$0xff] %v575_v17 }
 0x196   : > { %331 = vst [vmem:[#allocation7 + $0x18] sm:$0xff] %v576_v18  ;;  %334 = vst [vmem:[#allocation7 + $0x28] sm:$0xff] %v576_v18 }
 0x197 PF: > { %p563_p6 = scmp.ne.s32.totalorder %s854_s19, 1 }
 0x198   : > { %v577_v32 = vpack.c.bf16 (!%p563_p6), %v275_v14, %v274_v13  ;;  %v578_v33 = vpack.c.bf16 (!%p563_p6), %v277_v16, %v276_v15  ;;  %v805_v43 = vmov (!%p563_p6), 1966171168   ;;  %v424_v47 = vcombine.low (!%p563_p6), %v992_v52, %v994_v53  ;;  %v419_v58 = vld [vmem:[#allocation8] sm:$0xf] (!%p563_p6) }
 0x199   : > { %375 = sbr.rel (%p563_p6) target bundleno = 424 (0x1a8), region = 48  ;;  %v427_v44 = vunpack.c.l.s4 (!%p563_p6), %v805_v43  ;;  %v425_v48 = vcombine.low (!%p563_p6), %v996_v54, %v998_v55  ;;  %vm452_vm1 = vcmp.lt.s32.totalorder (!%p563_p6), %v222_v0, 512 }
 0x19a   : > { %388 = vst [vmem:[#allocation7] sm:$0xff] (!%p563_p6), %v577_v32  ;;  %389 = vst [vmem:[#allocation7 + $0x8] sm:$0xff] (!%p563_p6), %v578_v33 }
 0x19b   : > { %v428_v49 = vunpack.c.0.s8 (!%p563_p6), %v427_v44 }
 0x19c   : > { %v391_v34 = vld [vmem:[#allocation7 + $0x20] sm:$0xff] (!%p563_p6) }
 0x19d   : > { %v392_v35 = vld [vmem:[#allocation7 + $0x28] sm:$0xff] (!%p563_p6)  ;;  %v393_v36 = vunpack.c.l.bf16 (!%p563_p6), %v391_v34  ;;  %v394_v37 = vunpack.c.h.bf16 (!%p563_p6), %v391_v34  ;;  %v431_v50 = vsub.s32 (!%p563_p6), %v428_v49, %v975_v5 }
 0x19e   : > { %v395_v38 = vunpack.c.l.bf16 (!%p563_p6), %v392_v35  ;;  %v396_v39 = vunpack.c.h.bf16 (!%p563_p6), %v392_v35 }
 0x19f   : > { %v397_v9 = vadd.f32 (!%p563_p6), %v393_v36, %v274_v13  ;;  %v398_v40 = vadd.f32 (!%p563_p6), %v394_v37, %v275_v14  ;;  %v432_v51 = vrot.slane (!%p563_p6), %v424_v47, %v431_v50  ;;  %v439_v56 = vrot.slane (!%p563_p6), %v425_v48, %v431_v50 }
 0x1a0   : > { %v399_v41 = vadd.f32 %v395_v38, %v276_v15  ;;  %v400_v42 = vadd.f32 %v396_v39, %v277_v16 }
 0x1a1   : > { %v579_v45 = vpack.c.bf16 %v398_v40, %v397_v9  ;;  %v440_v57 = vcombine.low %v432_v51, %v439_v56 }
 0x1a2   : > { %v580_v46 = vpack.c.bf16 %v400_v42, %v399_v41 }
 0x1a3   : > { %417 = vst [vmem:[#allocation7 + $0x20] sm:$0xff] %v579_v45  ;;  %v447_v59 = vrot.slane %v440_v57, %v431_v50 }
 0x1a4   : > { %418 = vst [vmem:[#allocation7 + $0x28] sm:$0xff] %v580_v46 }
 0x1a5   : > { %v449_v60 = vadd.f32 %v447_v59, %v419_v58 }
 0x1a7   : > { %454 = vst.msk [vmem:[#allocation8] sm:$0xf] %vm452_vm1, %v449_v60 }
 0x1a8 PF: > { %p606_p8 = scmp.eq.s32.totalorder %s854_s19, 1  ;;  %s806_s29 = smov [#allocation7]  }
 0x1a9   : > { %s461_s30 = sshll.u32 %s806_s29, 4  ;;  %s462_s30 = int_to_ptr.vmem [resolvable:$true] %s461_s30 }
 0x1aa   : > { %s702_s5 = scalar_lea.vmem %s462_s30, 768  ;;  %p709_p9 = scmp.lt.s32.totalorder %s462_s30, %s462_s30 }
 0x1ab   : > { %p703_p3 = scmp.ne.s32.totalorder %s462_s30, %s702_s5  ;;  %p710_p11 = scmp.lt.s32.totalorder %s702_s5, %s702_s5 }
 0x1ad   : > { %p704_p7 = pnand %p703_p3, %p606_p8  ;;  %p711_p12 = por %p710_p11, %p709_p9 }
 0x1af   : > { %p705_p4 = pneg %p704_p7 }
 0x1b1   : > { %p712_p0 = pnand %p711_p12, %p705_p4 }
 0x1b3   : > { %715 = shalt.err (!%p712_p0)
}
 0x1b4   : > { %s716_s7 = scalar_lea.hbm %s1078_s3, 768 }
 0x1b5   : > { %p717_p2 = scmp.ne.s32.totalorder %s1078_s3, %s716_s7  ;;  %p722_p1 = scmp.lt.u32.totalorder %s716_s7, %s1078_s3 }
 0x1b7   : > { %p718_p10 = pnand %p717_p2, %p606_p8 }
 0x1b9   : > { %p719_p13 = pneg %p718_p10 }
 0x1bb   : > { %p724_p5 = pnand %p722_p1, %p719_p13 }
 0x1bd   : > { %727 = shalt.err (!%p724_p5)
}
 0x1be   : > { %s807_s13 = smov 256   ;;  %s808_s14 = smov 16  }
 0x1bf   : > { %588 = dma.vmem_to_hbm [thread:$0]  (%p606_p8), %s462_s30, 768, %s1078_s3, [#allocation4], %s807_s13, %s807_s13, %s808_s14  }
 0x1c0   : > { %s809_s21 = smov [#allocation8]  }
 0x1c1   : > { %s475_s25 = sshll.u32 %s809_s21, 4  ;;  %s476_s25 = int_to_ptr.vmem [resolvable:$true] %s475_s25 }
 0x1c2   : > { %s728_s27 = scalar_lea.vmem %s476_s25, 64  ;;  %p735_p4 = scmp.lt.s32.totalorder %s476_s25, %s476_s25 }
 0x1c3   : > { %p729_p6 = scmp.ne.s32.totalorder %s476_s25, %s728_s27  ;;  %p736_p9 = scmp.lt.s32.totalorder %s728_s27, %s728_s27 }
 0x1c5   : > { %p730_p3 = pnand %p729_p6, %p606_p8  ;;  %p737_p11 = por %p736_p9, %p735_p4 }
 0x1c7   : > { %p731_p7 = pneg %p730_p3 }
 0x1c9   : > { %p738_p12 = pnand %p737_p11, %p731_p7 }
 0x1cb   : > { %741 = shalt.err (!%p738_p12)
}
 0x1cc   : > { %s742_s24 = scalar_lea.hbm %s1079_s4, 64 }
 0x1cd   : > { %p743_p0 = scmp.ne.s32.totalorder %s1079_s4, %s742_s24  ;;  %p748_p13 = scmp.lt.u32.totalorder %s742_s24, %s1079_s4 }
 0x1cf   : > { %p744_p2 = pnand %p743_p0, %p606_p8 }
 0x1d1   : > { %p745_p10 = pneg %p744_p2 }
 0x1d3   : > { %p750_p1 = pnand %p748_p13, %p745_p10 }
 0x1d5   : > { %753 = shalt.err (!%p750_p1)
}
 0x1d6   : > { %590 = dma.vmem_to_hbm [thread:$0]  (%p606_p8), %s476_s25, 64, %s1079_s4, [#allocation9]  }
 0x1d7   : > { %779 = dma.done.wait (%p606_p8), [#allocation4], 768  }
 0x1d8   : > { %781 = vsyncadd (%p606_p8), [#allocation4], 4294966528 }
 0x1d9   : > { %783 = dma.done.wait (%p606_p8), [#allocation9], 64  }
 0x1da   : > { %785 = vsyncadd (%p606_p8), [#allocation9], 4294967232 }
 0x1db PF: > { %p18_p5 = scmp.ge.s32.totalorder %s872_s22, 4   ;;  %s1091_s15 = smov %s792_s16 }
 0x1dc   : > { %s1092_s16 = smov %s796_s17  ;;  %s1093_s17 = smov %s912_s11 }
 0x1dd   : > { %s1094_s18 = smov %s872_s22  ;;  %20 = sbr.rel (!%p18_p5) target bundleno = 6 (0x6), region = 93 }
 0x1e4   :  { %492 = vsyncpa [#allocation3], 1 }
 0x1e5   :  { %494 = vsyncpa [#allocation3 + $0x1], 1 }
 0x1e6   :  { %495 = vsyncpa [#allocation4], 1 }
 0x1e7   :  { %497 = vsyncpa [#allocation4 + $0x1], 1 }
 0x1e8   :  { %498 = vsyncpa [#allocation9], 1 }
 0x1e9   :  { %499 = vsyncpa [#allocation5], 1 }
 0x1ea   :  { %501 = vsyncpa [#allocation5 + $0x1], 1 }

</bundles_post_ra>
